<compile_context>
chip_gen: v7x
topology: tpu7x:2x2x1
jax: 0.10.0
libtpu: 0.0.40
codegen_flags: <defaults>
</compile_context>

<pallas_src>
import jax
import jax.numpy as jnp
from jax.experimental import pallas as pl
from jax.experimental.pallas import tpu as pltpu


def se_block_kernel(x_ref, w1_ref, w2t_ref, o_ref):
    # x_ref / o_ref : (TB, C, HW)      -- HW on the lane axis
    # w1_ref        : (C, Cr)          -- first FC, (in, out) layout
    # w2t_ref       : (C, Cr)          -- second FC, pre-transposed (w2.T)
    x = x_ref[...]
    hw = x.shape[-1]
    xf = x.astype(jnp.float32)

    # --- squeeze: per-(b, c) mean over the spatial (lane) axis -------------
    pooled = jnp.sum(xf, axis=-1, keepdims=True) * (1.0 / hw)      # (TB, C, 1)
    # (For very large HW, split HW into (HW//128, 128) and accumulate on the
    #  sublane axis to keep the lane-reduce chain off the XLU critical path.)

    # --- excitation: FC -> ReLU -> FC -> Sigmoid, on the VPU ----------------
    # These dims (M<=TB, K=C, N=Cr) are far too small for the MXU; broadcast-
    # multiply + reduce keeps the vector-extended slot free.
    w1 = w1_ref[...].astype(jnp.float32)                           # (C, Cr)
    w2t = w2t_ref[...].astype(jnp.float32)                         # (C, Cr)

    # h[b, r] = sum_c pooled[b, c] * w1[c, r]   (sublane reduce over C)
    h = jnp.sum(pooled * w1[None, :, :], axis=1, keepdims=True)    # (TB, 1, Cr)
    h = jnp.maximum(h, 0.0)                                        # ReLU

    # s[b, c] = sum_r h[b, r] * w2[r, c]        (lane reduce over Cr)
    s = jnp.sum(h * w2t[None, :, :], axis=-1, keepdims=True)       # (TB, C, 1)
    gate = jax.nn.sigmoid(s)                                       # (TB, C, 1)

    # --- scale: broadcast gate over the spatial axis (lane-dense store) ----
    o_ref[...] = (x * gate.astype(x.dtype)).astype(o_ref.dtype)


def _pick_batch_tile(B, C, HW, itemsize, max_block_bytes=2 * 1024 * 1024):
    """Largest batch tile TB that (a) divides B, (b) keeps one x block within
    `max_block_bytes` (so double-buffered in + out blocks stay far below the
    32 MiB scoped-VMEM default, incl. v7x's 64 MiB physical VMEM), and
    (c) leaves >= 2 grid steps when B > 1 so the DMA pipeline can overlap."""
    best = 1
    for tb in range(1, B + 1):
        if B % tb != 0:
            continue
        if tb * C * HW * itemsize > max_block_bytes:
            continue
        if B > 1 and B // tb < 2:
            continue
        best = tb
    return best


def se_block(x, w1, w2, *, donate_x=False):
    """x : (B, C, H, W)  (NCHW, like the PyTorch module), f32 or bf16.
       w1: (C, Cr)   first Linear weight, bias-free, (in, out) layout.
       w2: (Cr, C)   second Linear weight, bias-free, (in, out) layout.
       donate_x=True aliases x to the output (only if the caller no longer
       needs x) -- drops a full output HBM allocation on a memory-bound op."""
    B, C, H, W = x.shape
    HW = H * W
    Cr = w1.shape[1]
    assert w1.shape == (C, Cr) and w2.shape == (Cr, C)

    x_flat = x.reshape(B, C, HW)
    w1_f = w1.astype(jnp.float32)
    w2t_f = w2.T.astype(jnp.float32)       # (C, Cr): lane reduce in-kernel

    tb = _pick_batch_tile(B, C, HW, jnp.dtype(x.dtype).itemsize)
    grid = (B // tb,)

    extra = {}
    if donate_x:
        extra["input_output_aliases"] = {0: 0}   # x_flat -> output

    out_flat = pl.pallas_call(
        se_block_kernel,
        out_shape=jax.ShapeDtypeStruct((B, C, HW), x.dtype),
        grid_spec=pltpu.PrefetchScalarGridSpec(
            num_scalar_prefetch=0,
            grid=grid,
            in_specs=[
                # x: streamed over batch; add pipeline_mode=pl.Buffered(3)
                # here if DMA is still exposed on v7x's 3.2 TB/s HBM.
                pl.BlockSpec((tb, C, HW), lambda b: (b, 0, 0)),
                pl.BlockSpec((C, Cr), lambda b: (0, 0)),
                pl.BlockSpec((C, Cr), lambda b: (0, 0)),
            ],
            out_specs=pl.BlockSpec((tb, C, HW), lambda b: (b, 0, 0)),
        ),
        compiler_params=pltpu.CompilerParams(
            dimension_semantics=("parallel",)),
        **extra,
    )(x_flat, w1_f, w2t_f)

    return out_flat.reshape(B, C, H, W)


def se_block_ref(x, w1, w2):
    # pure-JAX reference mirroring the PyTorch forward
    pooled = jnp.mean(x, axis=(2, 3))                # (B, C)
    h = jnp.maximum(pooled @ w1, 0.0)
    gate = jax.nn.sigmoid(h @ w2)                    # (B, C)
    return x * gate[:, :, None, None]


if __name__ == "__main__":
    # Module config: in_channels = out_channels = 4, reduction = 1
    B, C, H, W = 2, 4, 16, 16
    reduction = 1
    C_red = C // reduction
    C_out = C  # out_channels must equal in_channels for the .view(b, c, 1, 1)

    key = jax.random.PRNGKey(0)
    kx, k1, k2 = jax.random.split(key, 3)
    x = jax.random.normal(kx, (B, C, H, W), dtype=jnp.float32)
    # deterministic synthetic weights (Linear, bias=False), stored (in, out)
    w1 = jax.random.normal(k1, (C, C_red), dtype=jnp.float32) * 0.1
    w2 = jax.random.normal(k2, (C_red, C_out), dtype=jnp.float32) * 0.1

    y = se_block(x, w1, w2)
    y = jax.block_until_ready(y)

    y_ref = se_block_ref(x, w1, w2)
    assert jnp.allclose(y, y_ref, atol=1e-5, rtol=1e-5), "mismatch vs reference"

    print("KERNEL_OK")
</pallas_src>

<mosaic_0001>
module attributes {stable_mosaic.version = 11 : i64} {
  func.func @se_block_kernel(%arg0: i32, %arg1: memref<1x4x256xf32, #tpu.memory_space<vmem>>, %arg2: memref<4x4xf32, #tpu.memory_space<vmem>>, %arg3: memref<4x4xf32, #tpu.memory_space<vmem>>, %arg4: memref<1x4x256xf32, #tpu.memory_space<vmem>>) attributes {dimension_semantics = [#tpu.dimension_semantics<parallel>], iteration_bounds = array<i64: 2>, scalar_prefetch = 0 : i64, scratch_operands = 0 : i64, tpu.core_type = #tpu.core_type<tc>, window_params = [{transform_indices = @transform_0, window_bounds = array<i64: 1, 4, 256>}, {pipeline_mode = #tpu.pipeline_mode<synchronous>, transform_indices = @transform_1, window_bounds = array<i64: 4, 4>}, {pipeline_mode = #tpu.pipeline_mode<synchronous>, transform_indices = @transform_2, window_bounds = array<i64: 4, 4>}, {transform_indices = @transform_3, window_bounds = array<i64: 1, 4, 256>}]} {
    %c0 = arith.constant 0 : index
    %c0_0 = arith.constant 0 : index
    %c0_1 = arith.constant 0 : index
    %0 = vector.load %arg1[%c0, %c0_0, %c0_1] : memref<1x4x256xf32, #tpu.memory_space<vmem>>, vector<1x4x256xf32>
    %cst = arith.constant dense<0.000000e+00> : vector<1x4xf32>
    %1 = vector.multi_reduction <add>, %0, %cst [2] : vector<1x4x256xf32> to vector<1x4xf32>
    %2 = vector.shape_cast %1 : vector<1x4xf32> to vector<1x4x1xf32>
    %cst_2 = arith.constant 3.906250e-03 : f32
    %3 = vector.broadcast %cst_2 : f32 to vector<1x4x1xf32>
    %4 = arith.mulf %2, %3 : vector<1x4x1xf32>
    %c0_3 = arith.constant 0 : index
    %c0_4 = arith.constant 0 : index
    %5 = vector.load %arg2[%c0_3, %c0_4] : memref<4x4xf32, #tpu.memory_space<vmem>>, vector<4x4xf32>
    %c0_5 = arith.constant 0 : index
    %c0_6 = arith.constant 0 : index
    %6 = vector.load %arg3[%c0_5, %c0_6] : memref<4x4xf32, #tpu.memory_space<vmem>>, vector<4x4xf32>
    %7 = vector.shape_cast %5 : vector<4x4xf32> to vector<1x4x4xf32>
    %8 = vector.broadcast %4 : vector<1x4x1xf32> to vector<1x4x4xf32>
    %9 = arith.mulf %8, %7 : vector<1x4x4xf32>
    %cst_7 = arith.constant dense<0.000000e+00> : vector<1x4xf32>
    %10 = vector.multi_reduction <add>, %9, %cst_7 [1] : vector<1x4x4xf32> to vector<1x4xf32>
    %11 = vector.shape_cast %10 : vector<1x4xf32> to vector<1x1x4xf32>
    %cst_8 = arith.constant 0.000000e+00 : f32
    %12 = vector.broadcast %cst_8 : f32 to vector<1x1x4xf32>
    %13 = arith.maximumf %11, %12 : vector<1x1x4xf32>
    %14 = vector.shape_cast %6 : vector<4x4xf32> to vector<1x4x4xf32>
    %15 = vector.broadcast %13 : vector<1x1x4xf32> to vector<1x4x4xf32>
    %16 = arith.mulf %15, %14 : vector<1x4x4xf32>
    %cst_9 = arith.constant dense<0.000000e+00> : vector<1x4xf32>
    %17 = vector.multi_reduction <add>, %16, %cst_9 [2] : vector<1x4x4xf32> to vector<1x4xf32>
    %18 = vector.shape_cast %17 : vector<1x4xf32> to vector<1x4x1xf32>
    %19 = arith.negf %18 : vector<1x4x1xf32>
    %20 = math.exp %19 : vector<1x4x1xf32>
    %cst_10 = arith.constant 1.000000e+00 : f32
    %21 = vector.broadcast %cst_10 : f32 to vector<1x4x1xf32>
    %22 = arith.addf %21, %20 : vector<1x4x1xf32>
    %23 = arith.divf %21, %22 : vector<1x4x1xf32>
    %24 = vector.broadcast %23 : vector<1x4x1xf32> to vector<1x4x256xf32>
    %25 = arith.mulf %0, %24 : vector<1x4x256xf32>
    %c0_11 = arith.constant 0 : index
    %c0_12 = arith.constant 0 : index
    %c0_13 = arith.constant 0 : index
    %26 = vector.load %arg4[%c0_11, %c0_12, %c0_13] : memref<1x4x256xf32, #tpu.memory_space<vmem>>, vector<1x4x256xf32>
    tpu.vector_store %arg4[%c0_11, %c0_12, %c0_13], %25 {strides = array<i32>} : memref<1x4x256xf32, #tpu.memory_space<vmem>>, vector<1x4x256xf32>,
    return
  }
  func.func @transform_0(%arg0: i32) -> (i32, i32, i32) {
    %c0_i32 = arith.constant 0 : i32
    %c0_i32_0 = arith.constant 0 : i32
    %c0_i32_1 = arith.constant 0 : i32
    return %arg0, %c0_i32, %c0_i32_0 : i32, i32, i32
  }
  func.func @transform_1(%arg0: i32) -> (i32, i32) {
    %c0_i32 = arith.constant 0 : i32
    %c0_i32_0 = arith.constant 0 : i32
    %c0_i32_1 = arith.constant 0 : i32
    return %c0_i32, %c0_i32_0 : i32, i32
  }
  func.func @transform_2(%arg0: i32) -> (i32, i32) {
    %c0_i32 = arith.constant 0 : i32
    %c0_i32_0 = arith.constant 0 : i32
    %c0_i32_1 = arith.constant 0 : i32
    return %c0_i32, %c0_i32_0 : i32, i32
  }
  func.func @transform_3(%arg0: i32) -> (i32, i32, i32) {
    %c0_i32 = arith.constant 0 : i32
    %c0_i32_0 = arith.constant 0 : i32
    %c0_i32_1 = arith.constant 0 : i32
    return %arg0, %c0_i32, %c0_i32_0 : i32, i32, i32
  }
}

</mosaic_0001>

<bundles_post_ra>
// kernel: tpu_custom_call.1
= control target key start
LH: loop header
LB: loop body
LE: loop exit
PB: predicated region body
PF: predicated region fallthrough
CT: control target
= control target key end

     0   :  { %8 = vsyncpa [#allocation3], 0  ;;  %s783_s0 = inlined_call_operand.hbm [shape: f32[2,4,256], index: 0, kind: input, shape index: {}]   ;;  %s784_s1 = inlined_call_operand.hbm [shape: f32[4,4], index: 1, kind: input, shape index: {}]   ;;  %s785_s2 = inlined_call_operand.vmem [shape: f32[4,4], index: 2, kind: input, shape index: {}]   ;;  %s786_s3 = inlined_call_operand.hbm [shape: f32[2,4,256], index: 3, kind: output, shape index: {}]  }
   0x1   :  { %10 = vsyncpa [#allocation3 + $0x1], 0 }
   0x2   :  { %11 = vsyncpa [#allocation6], 0 }
   0x3   :  { %12 = vsyncpa [#allocation4], 0 }
   0x4   :  { %14 = vsyncpa [#allocation4 + $0x1], 0  ;;  %s575_s12 = smov 0   ;;  %s577_s13 = smov 0  }
   0x5   :  { %s579_s14 = smov 0   ;;  %s581_s15 = smov 0  }
   0x6 LB: > { %s596_s16 = sadd.s32 4294967295, %s549_s15   ;;  %s339_s17 = sadd.s32 4294967294, %s549_s15   ;;  %s549_s15 = sphi %s581_s15, %s810_s15   ;;  %s545_s14 = sphi %s579_s14, %s809_s14   ;;  %s541_s13 = sphi %s577_s13, %s808_s13   ;;  %s537_s12 = sphi %s575_s12, %s807_s12  }
   0x7   : > { %p40_p0 = scmp.ne.s32.totalorder %s541_s13, %s537_s12  ;;  %p787_p1 = scmp.eq.s32.totalorder %s596_s16, 0 }
   0x8   : > { %p112_p3 = scmp.eq.s32.totalorder %s339_s17, 1  ;;  %p340_p5 = scmp.ge.s32.totalorder %s549_s15, 1 }
   0x9   : > { %p605_p4 = por %p787_p1, %p40_p0  ;;  %p119_p7 = scmp.lt.s32.totalorder %s549_s15, 3 }
   0xa   : > { %p610_p6 = por %p112_p3, %p40_p0  ;;  %s551_s21 = smov [#allocation5]  }
   0xb   : > { %s790_s18 = scalar_select %p605_p4, 1, 0 }
   0xc   : > { %s791_s19 = scalar_select %p610_p6, 1, 0 }
   0xd   : > { %p615_p8 = pnand %p340_p5, %p119_p7  ;;  %s132_s22 = sshll.u32 %s551_s21, 4  ;;  %s133_s22 = int_to_ptr.vmem [resolvable:$true] %s132_s22 }
   0xe   : > { %s623_s23 = sadd.s32 1, %s549_s15   ;;  %s27_s27 = sadd.s32 1, %s545_s14 }
   0xf   : > { %s792_s20 = scalar_select %p615_p8, 1, 0 }
  0x10   : > { %p366_p10 = pneg %p615_p8  ;;  %s24_s25 = ssub.s32 %s549_s15, %s623_s23 }
  0x11   : > { %p633_p12 = scmp.eq.s32.totalorder %s24_s25, 0  ;;  %s421_s30 = scalar_lea.hbm %s784_s1, 64 }
  0x12   : > { %p627_p11 = pnand %p366_p10, %p787_p1  ;;  %p422_p0 = scmp.ne.s32.totalorder %s784_s1, %s421_s30 }
  0x13   : > { %s794_s26 = scalar_select %p633_p12, 1, 0 }
  0x14   : > { %p423_p3 = pneg %p627_p11  ;;  %p428_p10 = scmp.lt.u32.totalorder %s421_s30, %s784_s1 }
  0x16   : > { %p424_p5 = pnand %p423_p3, %p422_p0 }
  0x18   : > { %p425_p7 = pneg %p424_p5 }
  0x1a   : > { %p430_p9 = pnand %p428_p10, %p425_p7 }
  0x1c   : > { %433 = shalt.err (!%p430_p9)
}
  0x1d   : > { %s434_s8 = scalar_lea.vmem %s133_s22, 64  ;;  %p442_p6 = scmp.lt.s32.totalorder %s133_s22, %s133_s22 }
  0x1e   : > { %p435_p1 = scmp.ne.s32.totalorder %s133_s22, %s434_s8  ;;  %p443_p4 = scmp.lt.s32.totalorder %s434_s8, %s434_s8 }
  0x20   : > { %p437_p2 = pnand %p435_p1, %p423_p3  ;;  %p444_p8 = por %p443_p4, %p442_p6 }
  0x22   : > { %p438_p13 = pneg %p437_p2 }
  0x24   : > { %p445_p12 = pnand %p444_p8, %p438_p13 }
  0x26   : > { %448 = shalt.err (!%p445_p12)
}
  0x27   : > { %369 = dma.hbm_to_vmem [thread:$0]  (!%p627_p11), %s784_s1, 64, %s133_s22, [#allocation6]  }
  0x28   : > { %p795_p1 = scmp.ne.s32.totalorder %s794_s26, 0  ;;  %p35_p2 = scmp.eq.s32.totalorder %s549_s15, 0 }
  0x29   : > { %p796_p4 = scmp.ne.s32.totalorder %s545_s14, %s541_s13  ;;  %p797_p6 = scmp.eq.s32.totalorder %s596_s16, 1 }
  0x2a   : > { %s659_s11 = scalar_select %p795_p1, %s545_s14, %s27_s27  }
  0x2b   : > { %p667_p8 = por %p797_p6, %p796_p4  ;;  %p379_p9 = scmp.lt.s32.totalorder %s549_s15, 2 }
  0x2c   : > { %s146_s21 = sand.u32 1, %s545_s14   ;;  %p799_p12 = pmov %p796_p4 }
  0x2d   : > { %s343_s24 = sshll.u32 %s146_s21, 3  ;;  %s356_s25 = sshll.u32 %s549_s15, 7 }
  0x2e   : > { %p36_p13 = por %p35_p2, %p799_p12  ;;  %s680_s22 = scalar_lea.hbm %s783_s0, %s356_s25 }
  0x2f   : > { %s150_s26 = scalar_lea.vmem [#allocation2], %s343_s24  ;;  %s147_s4 = scalar_lea.sflag [#allocation3], %s146_s21 }
  0x30   : > { %s158_s27 = sshll.u32 %s150_s26, 4  ;;  %p682_p11 = pnand %p379_p9, %p36_p13  ;;  %s686_s27 = int_to_ptr.vmem [resolvable:$true] %s158_s27 }
  0x31   : > { %s449_s5 = scalar_lea.hbm %s680_s22, 128  ;;  %s454_s8 = scalar_lea.hbm %s783_s0, 256 }
  0x32   : > { %p450_p0 = scmp.ne.s32.totalorder %s680_s22, %s449_s5  ;;  %p451_p3 = pneg %p682_p11 }
  0x33   : > { %p455_p10 = scmp.lt.u32.totalorder %s680_s22, %s783_s0  ;;  %p456_p1 = scmp.lt.u32.totalorder %s454_s8, %s449_s5 }
  0x34   : > { %p452_p5 = pnand %p451_p3, %p450_p0  ;;  %p458_p4 = scmp.lt.u32.totalorder %s449_s5, %s680_s22 }
  0x35   : > { %p457_p2 = por %p456_p1, %p455_p10 }
  0x36   : > { %p453_p7 = pneg %p452_p5 }
  0x37   : > { %p459_p6 = por %p458_p4, %p457_p2 }
  0x39   : > { %p460_p9 = pnand %p459_p6, %p453_p7 }
  0x3b   : > { %463 = shalt.err (!%p460_p9)
}
  0x3c   : > { %s464_s21 = scalar_lea.vmem %s686_s27, 128  ;;  %s552_s24 = smov [#allocation2]  }
  0x3d   : > { %p465_p12 = scmp.ne.s32.totalorder %s686_s27, %s464_s21  ;;  %s469_s25 = sshll.u32 %s552_s24, 4  ;;  %s470_s25 = int_to_ptr.vmem [resolvable:$false] %s469_s25 }
  0x3e   : > { %s471_s28 = scalar_lea.vmem %s470_s25, 256  ;;  %p472_p5 = scmp.lt.s32.totalorder %s686_s27, %s470_s25 }
  0x3f   : > { %p467_p13 = pnand %p465_p12, %p451_p3  ;;  %p473_p10 = scmp.lt.s32.totalorder %s471_s28, %s464_s21 }
  0x41   : > { %p468_p0 = pneg %p467_p13  ;;  %p474_p1 = por %p473_p10, %p472_p5 }
  0x43   : > { %p475_p2 = pnand %p474_p1, %p468_p0 }
  0x45   : > { %478 = shalt.err (!%p475_p2)
}
  0x46   : > { %373 = dma.hbm_to_vmem [thread:$0]  (!%p682_p11), %s680_s22, 128, %s686_s27, %s147_s4  }
  0x47   : > { %p801_p7 = scmp.ne.s32.totalorder %s792_s20, 0 }
  0x48   : > { %s716_s29 = sand.u32 (!%p801_p7), 1, %s541_s13   ;;  %p802_p3 = scmp.ne.s32.totalorder (!%p801_p7), %s790_s18, 0 }
  0x49   : > { %167 = sbr.rel (%p801_p7) target bundleno = 440 (0x1b8), region = 32  ;;  %s347_s26 = sshll.u32 (!%p801_p7), %s716_s29, 3 }
  0x4a   : > { %s170_s5 = scalar_lea.sflag (!%p801_p7), [#allocation3], %s716_s29  ;;  %s173_s6 = scalar_lea.vmem (!%p801_p7), [#allocation2], %s347_s26 }
  0x50   : > { %524 = dma.done.wait (%p802_p3), %s170_s5, 128  }
  0x51   : > { %526 = vsyncadd (%p802_p3), %s170_s5, 4294967168  ;;  %p803_p11 = scmp.eq.s32.totalorder %s596_s16, 0 }
  0x53   : > { %528 = dma.done.wait (%p803_p11), [#allocation6], 64   ;;  %p804_p4 = pmov %p803_p11 }
  0x54   : > { %vm204_vm0 = vcmask 1043456   ;;  %v200_v0 = vld [vmem:[%s173_s6] sm:$0xff]  ;;  %v211_v5 = vld [vmem:[#allocation5] sm:$0xf]  ;;  %vm214_vm1 = vcmask 27648   ;;  %v237_v26 = vlaneseq  ;;  %s357_s22 = sshll.u32 %s596_s16, 7 }
  0x55   : > { %530 = vsyncadd (%p804_p4), [#allocation6], 4294967232  ;;  %v202_v1 = vcombine.high %v200_v0, %v200_v0  ;;  %v205_v2 = vsel %vm204_vm0, %v200_v0, 0.0  ;;  %v212_v16 = vld [vmem:[%s785_s2] sm:$0xf]  ;;  %s199_s27 = scalar_lea.vmem [#allocation7], %s347_s26  ;;  %s739_s8 = scalar_lea.hbm %s786_s3, %s357_s22 }
  0x56   : > { %v553_v24 = vmov 839922192   ;;  %v238_v28 = vshrl.u32 %v237_v26, 7  ;;  %s259_s30 = sshll.u32 %s199_s27, 4  ;;  %s245_s9 = scalar_lea.sflag [#allocation4], %s716_s29  ;;  %s741_s30 = int_to_ptr.vmem [resolvable:$true] %s259_s30 }
  0x57   : > { %v206_v3 = vsel %vm204_vm0, %v202_v1, 0.0  ;;  %v235_v25 = vunpack.c.l.s4 %v553_v24  ;;  %s479_s10 = scalar_lea.vmem %s741_s30, 128  ;;  %s554_s16 = smov [#allocation7]  }
  0x58   : > { %v207_v4 = vadd.f32 %v206_v3, %v205_v2  ;;  %p480_p6 = scmp.ne.s32.totalorder %s741_s30, %s479_s10  ;;  %s483_s21 = sshll.u32 %s554_s16, 4  ;;  %s484_s21 = int_to_ptr.vmem [resolvable:$false] %s483_s21 }
  0x59   : > { %v236_v27 = vunpack.c.0.s8 %v235_v25  ;;  %s485_s24 = scalar_lea.vmem %s484_s21, 256  ;;  %p486_p13 = scmp.lt.s32.totalorder %s741_s30, %s484_s21 }
  0x5a   : > { %208 = vadd.xlane.f32.xlu0 %v207_v4  ;;  %p481_p9 = pnand %p480_p6, %p667_p8  ;;  %p487_p0 = scmp.lt.s32.totalorder %s485_s24, %s479_s10 }
  0x5b   : > { %v239_v29 = vsub.s32 %v236_v27, %v238_v28 }
  0x5c   : > { %p482_p12 = pneg %p481_p9  ;;  %p488_p5 = por %p487_p0, %p486_p13 }
  0x5e   : > { %p489_p10 = pnand %p488_p5, %p482_p12 }
  0xe7   : > { %v209_v6 = vpop.xlane.xlu0 %208 }
  0xe8   : > { %v210_v7 = vmul.f32 0.00390625, %v209_v6 }
  0xea   : > { %v213_v8 = vmul.f32 %v211_v5, %v210_v7 }
  0xec   : > { %v215_v9 = vsel %vm214_vm1, %v213_v8, 0.0 }
  0xed   : > { %v216_v10 = vrot.slane %v215_v9, 4 }
  0xef   : > { %v217_v11 = vadd.f32 %v216_v10, %v215_v9 }
  0xf1   : > { %v218_v12 = vrot.slane %v217_v11, 2 }
  0xf3   : > { %v219_v13 = vadd.f32 %v218_v12, %v217_v11 }
  0xf5   : > { %v220_v14 = vrot.slane %v219_v13, 1 }
  0xf7   : > { %v221_v15 = vadd.f32 %v220_v14, %v219_v13 }
  0xf9   : > { %v222_v17 = vmax.f32 %v221_v15, 0.0 }
  0xfb   : > { %v223_v18 = vmul.f32 %v222_v17, %v212_v16 }
  0xfd   : > { %v224_v19 = vsel %vm214_vm1, %v223_v18, 0.0 }
  0xfe   : > { %225 = vadd.xlane.f32.xlu0 %v224_v19 }
 0x18b   : > { %v226_v20 = vpop.xlane.xlu0 %225 }
 0x18c   : > { %v350_v21 = vmul.f32 -1.442695, %v226_v20 }
 0x18e   : > { %417 = vpow2.f32 %v350_v21 }
 0x198   : > { %v418_v22 = vpop.eup %417 }
 0x199   : > { %v230_v23 = vadd.f32 1.0, %v418_v22 }
 0x19b   : > { %419 = vrcp.f32 %v230_v23 }
 0x1a5   : > { %v420_v30 = vpop.eup %419 }
 0x1a6   : > { %v240_v31 = vrot.slane %v420_v30, %v239_v29 }
 0x1a8   : > { %v242_v32 = vmul.f32 %v240_v31, %v200_v0 }
 0x1aa   : > { %243 = vst [vmem:[%s199_s27] sm:$0xff] %v242_v32 }
 0x1ab   : > { %492 = shalt.err (!%p489_p10)
}
 0x1ac   : > { %s493_s25 = scalar_lea.hbm %s739_s8, 128  ;;  %s497_s26 = scalar_lea.hbm %s786_s3, 256 }
 0x1ad   : > { %p494_p1 = scmp.ne.s32.totalorder %s739_s8, %s493_s25  ;;  %p498_p3 = scmp.lt.u32.totalorder %s739_s8, %s786_s3 }
 0x1ae   : > { %p499_p11 = scmp.lt.u32.totalorder %s497_s26, %s493_s25  ;;  %p501_p6 = scmp.lt.u32.totalorder %s493_s25, %s739_s8 }
 0x1af   : > { %p495_p2 = pnand %p494_p1, %p667_p8 }
 0x1b0   : > { %p500_p4 = por %p499_p11, %p498_p3 }
 0x1b1   : > { %p496_p7 = pneg %p495_p2 }
 0x1b2   : > { %p502_p9 = por %p501_p6, %p500_p4 }
 0x1b4   : > { %p503_p12 = pnand %p502_p9, %p496_p7 }
 0x1b6   : > { %506 = shalt.err (!%p503_p12)
}
 0x1b7   : > { %364 = dma.vmem_to_hbm [thread:$0]  (%p667_p8), %s741_s30, 128, %s739_s8, %s245_s9  }
 0x1b8 PF: > { %s271_s18 = sand.u32 1, %s537_s12   ;;  %p805_p13 = scmp.ne.s32.totalorder %s791_s19, 0 }
 0x1b9   : > { %p806_p0 = scmp.ge.s32.totalorder %s549_s15, 2  ;;  %s272_s20 = scalar_lea.sflag [#allocation4], %s271_s18 }
 0x1bb   : > { %p375_p5 = pnand %p806_p0, %p805_p13 }
 0x1bd   : > { %532 = dma.done.wait (!%p375_p5), %s272_s20, 128  }
 0x1be   : > { %534 = vsyncadd (!%p375_p5), %s272_s20, 4294967168  ;;  %p17_p10 = scmp.ge.s32.totalorder %s623_s23, 4   ;;  %s807_s12 = smov %s541_s13 }
 0x1bf   : > { %s808_s13 = smov %s545_s14  ;;  %s809_s14 = smov %s659_s11 }
 0x1c0   : > { %s810_s15 = smov %s623_s23  ;;  %19 = sbr.rel (!%p17_p10) target bundleno = 6 (0x6), region = 81 }
 0x1c7   :  { %277 = vsyncpa [#allocation3], 1 }
 0x1c8   :  { %279 = vsyncpa [#allocation3 + $0x1], 1 }
 0x1c9   :  { %280 = vsyncpa [#allocation6], 1 }
 0x1ca   :  { %281 = vsyncpa [#allocation4], 1 }
 0x1cb   :  { %283 = vsyncpa [#allocation4 + $0x1], 1 }

</bundles_post_ra>
